<compile_context>
chip_gen: v7x
topology: tpu7x:2x2x1
jax: 0.10.0
libtpu: 0.0.40
codegen_flags: <defaults>
</compile_context>

<pallas_src>
import functools

import jax
import jax.numpy as jnp
from jax.experimental import pallas as pl
from jax.experimental.pallas import tpu as pltpu


def _round_up(n: int, m: int) -> int:
    return ((n + m - 1) // m) * m


def _actor_kernel(s_ref, w1_ref, b1_ref, w2_ref, b2_ref, w3_ref, b3_ref, o_ref,
                  *, action_size):
    # fc1 + ReLU  (bf16 MXU matmul, f32 accumulate + epilogue)
    x = s_ref[...].astype(jnp.bfloat16)
    h1 = jnp.dot(x, w1_ref[...], preferred_element_type=jnp.float32) + b1_ref[...]
    h1 = jnp.maximum(h1, 0.0)
    # fc2 + ReLU
    h2 = jnp.dot(h1.astype(jnp.bfloat16), w2_ref[...],
                 preferred_element_type=jnp.float32) + b2_ref[...]
    h2 = jnp.maximum(h2, 0.0)
    # fc3 + tanh (only the real action columns are activated and stored)
    h3 = jnp.dot(h2.astype(jnp.bfloat16), w3_ref[...],
                 preferred_element_type=jnp.float32) + b3_ref[...]
    o_ref[...] = jnp.tanh(h3[:, :action_size]).astype(o_ref.dtype)


def prepare_params(params):
    """One-time prep: pad feature dims to 128-multiples and cast weights to bf16.

    Expects params = (w1, b1, w2, b2, w3, b3) with weights in (in, out) layout
    (i.e. PyTorch nn.Linear weight transposed). Zero padding keeps results exact.
    Call once and reuse the result across every actor_forward call.
    """
    w1, b1, w2, b2, w3, b3 = params
    S, F1 = w1.shape
    F2 = w2.shape[1]
    A = w3.shape[1]
    F1p, F2p, Ap = _round_up(F1, 128), _round_up(F2, 128), _round_up(A, 128)

    def pad2(x, rows, cols):
        return jnp.pad(x, ((0, rows - x.shape[0]), (0, cols - x.shape[1])))

    w1p = pad2(w1, S, F1p).astype(jnp.bfloat16)          # state dim left unpadded
    w2p = pad2(w2, F1p, F2p).astype(jnp.bfloat16)
    w3p = pad2(w3, F2p, Ap).astype(jnp.bfloat16)
    b1p = pad2(jnp.reshape(b1, (1, -1)), 1, F1p).astype(jnp.float32)
    b2p = pad2(jnp.reshape(b2, (1, -1)), 1, F2p).astype(jnp.float32)
    b3p = pad2(jnp.reshape(b3, (1, -1)), 1, Ap).astype(jnp.float32)
    return (w1p, b1p, w2p, b2p, w3p, b3p)


def _pick_tile(B, block_b):
    """Batch tile: single 16-row-aligned tile for tiny batches, otherwise aim for
    >= 4 grid steps (2 per TensorCore on v7x) capped at block_b rows/tile."""
    if B <= 32:
        return _round_up(B, 16)
    return max(16, min(block_b, _round_up(pl.cdiv(B, 4), 16)))


@functools.partial(jax.jit, static_argnames=("action_size", "block_b"))
def actor_forward(state, prepared, action_size, block_b=512):
    """state: (B, state_size) or (state_size,) f32. prepared: from prepare_params.
    Returns (B, action_size) f32."""
    if state.ndim == 1:
        state = state[None, :]
    w1p, b1p, w2p, b2p, w3p, b3p = prepared

    B, S = state.shape
    F1p = w1p.shape[1]
    F2p = w2p.shape[1]
    Ap = w3p.shape[1]
    A = action_size

    TB = _pick_tile(B, block_b)
    Bp = _round_up(B, TB)

    # Only the activation gets (cheap) batch padding; weights are already prepped.
    sp = jnp.pad(state, ((0, Bp - B), (0, 0)))

    flops = 2 * Bp * (S * F1p + F1p * F2p + F2p * Ap)
    bytes_accessed = (
        4 * Bp * S                               # state (f32)
        + 2 * (S * F1p + F1p * F2p + F2p * Ap)   # weights (bf16, resident)
        + 4 * (F1p + F2p + Ap)                   # biases (f32)
        + 4 * Bp * A                             # output (f32, true width)
    )
    cost = pl.CostEstimate(flops=flops, transcendentals=Bp * A,
                           bytes_accessed=bytes_accessed)

    resident = lambda shape: pl.BlockSpec(shape, lambda i: (0, 0))

    out = pl.pallas_call(
        functools.partial(_actor_kernel, action_size=A),
        out_shape=jax.ShapeDtypeStruct((Bp, A), jnp.float32),
        grid=(Bp // TB,),
        in_specs=[
            pl.BlockSpec((TB, S), lambda i: (i, 0)),      # state: tiled over batch
            resident((S, F1p)), resident((1, F1p)),       # fc1 weight/bias (resident)
            resident((F1p, F2p)), resident((1, F2p)),     # fc2 weight/bias (resident)
            resident((F2p, Ap)), resident((1, Ap)),       # fc3 weight/bias (resident)
        ],
        out_specs=pl.BlockSpec((TB, A), lambda i: (i, 0)),
        compiler_params=pltpu.CompilerParams(
            dimension_semantics=("parallel",),            # megacore sharding on v7x
        ),
        cost_estimate=cost,
    )(sp, w1p, b1p, w2p, b2p, w3p, b3p)

    return out[:B]


def init_actor_params(key, state_size, action_size, fc1_units=400, fc2_units=300):
    """Deterministic init mirroring Actor.reset_parameters (same distributions/shapes).

    PyTorch hidden_init uses weight.size()[0] == out_features as 'fan_in'
    (a quirk of the reference code) -> lim = 1/sqrt(out_features)."""
    k1, k2, k3, kb1, kb2, kb3 = jax.random.split(key, 6)

    lim1 = 1.0 / jnp.sqrt(jnp.float32(fc1_units))
    lim2 = 1.0 / jnp.sqrt(jnp.float32(fc2_units))
    lim3 = 0.003

    # Weights stored already transposed: (in, out) for lane-dense matmul.
    w1 = jax.random.uniform(k1, (state_size, fc1_units), jnp.float32, -lim1, lim1)
    w2 = jax.random.uniform(k2, (fc1_units, fc2_units), jnp.float32, -lim2, lim2)
    w3 = jax.random.uniform(k3, (fc2_units, action_size), jnp.float32, -lim3, lim3)

    # Biases: PyTorch Linear default init uniform(-1/sqrt(in_features), +..).
    bl1 = 1.0 / jnp.sqrt(jnp.float32(state_size))
    bl2 = 1.0 / jnp.sqrt(jnp.float32(fc1_units))
    bl3 = 1.0 / jnp.sqrt(jnp.float32(fc2_units))
    b1 = jax.random.uniform(kb1, (1, fc1_units), jnp.float32, -bl1, bl1)
    b2 = jax.random.uniform(kb2, (1, fc2_units), jnp.float32, -bl2, bl2)
    b3 = jax.random.uniform(kb3, (1, action_size), jnp.float32, -bl3, bl3)

    return (w1, b1, w2, b2, w3, b3)


if __name__ == "__main__":
    key = jax.random.PRNGKey(0)
    kp, kx, kx2 = jax.random.split(key, 3)

    state_size = 32
    action_size = 4
    raw_params = init_actor_params(kp, state_size, action_size,
                                   fc1_units=400, fc2_units=300)
    w1, b1, w2, b2, w3, b3 = raw_params

    # One-time weight prep (padding + bf16 cast) hoisted out of the forward path.
    prepared = jax.block_until_ready(prepare_params(raw_params))

    def ref_f32(s):
        return jnp.tanh(
            jnp.maximum(jnp.maximum(s @ w1 + b1, 0.0) @ w2 + b2, 0.0) @ w3 + b3
        )

    # Small batch (single 16-row tile, grid=(1,)).
    batch = 8
    state = jax.random.normal(kx, (batch, state_size), jnp.float32)
    out = jax.block_until_ready(actor_forward(state, prepared, action_size))
    assert out.shape == (batch, action_size)
    assert bool(jnp.all(jnp.abs(out) <= 1.0))
    # bf16 matmul inputs with f32 accumulation -> loose tolerance vs f32 reference.
    assert bool(jnp.allclose(out, ref_f32(state), atol=2e-2, rtol=2e-2))

    # Larger ragged batch: exercises the batch-tiled grid (>= 4 steps) + batch padding.
    batch2 = 272
    state2 = jax.random.normal(kx2, (batch2, state_size), jnp.float32)
    out2 = jax.block_until_ready(
        actor_forward(state2, prepared, action_size, block_b=128))
    assert out2.shape == (batch2, action_size)
    assert bool(jnp.all(jnp.abs(out2) <= 1.0))
    assert bool(jnp.allclose(out2, ref_f32(state2), atol=2e-2, rtol=2e-2))

    # 1-D state path (matches the PyTorch unsqueeze behavior).
    out1 = jax.block_until_ready(actor_forward(state[0], prepared, action_size))
    assert out1.shape == (1, action_size)

    print("KERNEL_OK")
</pallas_src>

<mosaic_0001>
module attributes {stable_mosaic.version = 11 : i64} {
  func.func @_actor_kernel(%arg0: i32, %arg1: memref<16x32xf32, #tpu.memory_space<vmem>>, %arg2: memref<32x512xbf16, #tpu.memory_space<vmem>>, %arg3: memref<1x512xf32, #tpu.memory_space<vmem>>, %arg4: memref<512x384xbf16, #tpu.memory_space<vmem>>, %arg5: memref<1x384xf32, #tpu.memory_space<vmem>>, %arg6: memref<384x128xbf16, #tpu.memory_space<vmem>>, %arg7: memref<1x128xf32, #tpu.memory_space<vmem>>, %arg8: memref<16x4xf32, #tpu.memory_space<vmem>>) attributes {dimension_semantics = [#tpu.dimension_semantics<parallel>], iteration_bounds = array<i64: 1>, scalar_prefetch = 0 : i64, scratch_operands = 0 : i64, tpu.core_type = #tpu.core_type<tc>, window_params = [{transform_indices = @transform_0, window_bounds = array<i64: 16, 32>}, {pipeline_mode = #tpu.pipeline_mode<synchronous>, transform_indices = @transform_1, window_bounds = array<i64: 32, 512>}, {pipeline_mode = #tpu.pipeline_mode<synchronous>, transform_indices = @transform_2, window_bounds = array<i64: 1, 512>}, {pipeline_mode = #tpu.pipeline_mode<synchronous>, transform_indices = @transform_3, window_bounds = array<i64: 512, 384>}, {pipeline_mode = #tpu.pipeline_mode<synchronous>, transform_indices = @transform_4, window_bounds = array<i64: 1, 384>}, {pipeline_mode = #tpu.pipeline_mode<synchronous>, transform_indices = @transform_5, window_bounds = array<i64: 384, 128>}, {pipeline_mode = #tpu.pipeline_mode<synchronous>, transform_indices = @transform_6, window_bounds = array<i64: 1, 128>}, {transform_indices = @transform_7, window_bounds = array<i64: 16, 4>}]} {
    %c0 = arith.constant 0 : index
    %c0_0 = arith.constant 0 : index
    %0 = vector.load %arg1[%c0, %c0_0] : memref<16x32xf32, #tpu.memory_space<vmem>>, vector<16x32xf32>
    %1 = arith.truncf %0 : vector<16x32xf32> to vector<16x32xbf16>
    %c0_1 = arith.constant 0 : index
    %c0_2 = arith.constant 0 : index
    %2 = vector.load %arg2[%c0_1, %c0_2] : memref<32x512xbf16, #tpu.memory_space<vmem>>, vector<32x512xbf16>
    %cst = arith.constant dense<0.000000e+00> : vector<16x512xf32>
    %3 = tpu.matmul %1, %2, %cst {dimension_numbers = #tpu.dot_dimension_numbers<[1], [0], [0], [1], [0, 0, 1, 1], [], []>} : vector<16x32xbf16>, vector<32x512xbf16>, vector<16x512xf32> -> vector<16x512xf32>
    %c0_3 = arith.constant 0 : index
    %c0_4 = arith.constant 0 : index
    %4 = vector.load %arg3[%c0_3, %c0_4] : memref<1x512xf32, #tpu.memory_space<vmem>>, vector<1x512xf32>
    %5 = vector.broadcast %4 : vector<1x512xf32> to vector<16x512xf32>
    %6 = arith.addf %3, %5 : vector<16x512xf32>
    %cst_5 = arith.constant 0.000000e+00 : f32
    %7 = vector.broadcast %cst_5 : f32 to vector<16x512xf32>
    %8 = arith.maximumf %6, %7 : vector<16x512xf32>
    %9 = arith.truncf %8 : vector<16x512xf32> to vector<16x512xbf16>
    %c0_6 = arith.constant 0 : index
    %c0_7 = arith.constant 0 : index
    %10 = vector.load %arg4[%c0_6, %c0_7] : memref<512x384xbf16, #tpu.memory_space<vmem>>, vector<512x384xbf16>
    %cst_8 = arith.constant dense<0.000000e+00> : vector<16x384xf32>
    %11 = tpu.matmul %9, %10, %cst_8 {dimension_numbers = #tpu.dot_dimension_numbers<[1], [0], [0], [1], [0, 0, 1, 1], [], []>} : vector<16x512xbf16>, vector<512x384xbf16>, vector<16x384xf32> -> vector<16x384xf32>
    %c0_9 = arith.constant 0 : index
    %c0_10 = arith.constant 0 : index
    %12 = vector.load %arg5[%c0_9, %c0_10] : memref<1x384xf32, #tpu.memory_space<vmem>>, vector<1x384xf32>
    %13 = vector.broadcast %12 : vector<1x384xf32> to vector<16x384xf32>
    %14 = arith.addf %11, %13 : vector<16x384xf32>
    %cst_11 = arith.constant 0.000000e+00 : f32
    %15 = vector.broadcast %cst_11 : f32 to vector<16x384xf32>
    %16 = arith.maximumf %14, %15 : vector<16x384xf32>
    %17 = arith.truncf %16 : vector<16x384xf32> to vector<16x384xbf16>
    %c0_12 = arith.constant 0 : index
    %c0_13 = arith.constant 0 : index
    %18 = vector.load %arg6[%c0_12, %c0_13] : memref<384x128xbf16, #tpu.memory_space<vmem>>, vector<384x128xbf16>
    %cst_14 = arith.constant dense<0.000000e+00> : vector<16x128xf32>
    %19 = tpu.matmul %17, %18, %cst_14 {dimension_numbers = #tpu.dot_dimension_numbers<[1], [0], [0], [1], [0, 0, 1, 1], [], []>} : vector<16x384xbf16>, vector<384x128xbf16>, vector<16x128xf32> -> vector<16x128xf32>
    %c0_15 = arith.constant 0 : index
    %c0_16 = arith.constant 0 : index
    %20 = vector.load %arg7[%c0_15, %c0_16] : memref<1x128xf32, #tpu.memory_space<vmem>>, vector<1x128xf32>
    %21 = vector.broadcast %20 : vector<1x128xf32> to vector<16x128xf32>
    %22 = arith.addf %19, %21 : vector<16x128xf32>
    %23 = vector.extract_strided_slice %22 {offsets = [0, 0], sizes = [16, 4], strides = [1, 1]} : vector<16x128xf32> to vector<16x4xf32>
    %24 = math.tanh %23 : vector<16x4xf32>
    %c0_17 = arith.constant 0 : index
    %c0_18 = arith.constant 0 : index
    %25 = vector.load %arg8[%c0_17, %c0_18] : memref<16x4xf32, #tpu.memory_space<vmem>>, vector<16x4xf32>
    tpu.vector_store %arg8[%c0_17, %c0_18], %24 {strides = array<i32>} : memref<16x4xf32, #tpu.memory_space<vmem>>, vector<16x4xf32>,
    return
  }
  func.func @transform_0(%arg0: i32) -> (i32, i32) {
    %c0_i32 = arith.constant 0 : i32
    %c0_i32_0 = arith.constant 0 : i32
    return %arg0, %c0_i32 : i32, i32
  }
  func.func @transform_1(%arg0: i32) -> (i32, i32) {
    %c0_i32 = arith.constant 0 : i32
    %c0_i32_0 = arith.constant 0 : i32
    %c0_i32_1 = arith.constant 0 : i32
    return %c0_i32, %c0_i32_0 : i32, i32
  }
  func.func @transform_2(%arg0: i32) -> (i32, i32) {
    %c0_i32 = arith.constant 0 : i32
    %c0_i32_0 = arith.constant 0 : i32
    %c0_i32_1 = arith.constant 0 : i32
    return %c0_i32, %c0_i32_0 : i32, i32
  }
  func.func @transform_3(%arg0: i32) -> (i32, i32) {
    %c0_i32 = arith.constant 0 : i32
    %c0_i32_0 = arith.constant 0 : i32
    %c0_i32_1 = arith.constant 0 : i32
    return %c0_i32, %c0_i32_0 : i32, i32
  }
  func.func @transform_4(%arg0: i32) -> (i32, i32) {
    %c0_i32 = arith.constant 0 : i32
    %c0_i32_0 = arith.constant 0 : i32
    %c0_i32_1 = arith.constant 0 : i32
    return %c0_i32, %c0_i32_0 : i32, i32
  }
  func.func @transform_5(%arg0: i32) -> (i32, i32) {
    %c0_i32 = arith.constant 0 : i32
    %c0_i32_0 = arith.constant 0 : i32
    %c0_i32_1 = arith.constant 0 : i32
    return %c0_i32, %c0_i32_0 : i32, i32
  }
  func.func @transform_6(%arg0: i32) -> (i32, i32) {
    %c0_i32 = arith.constant 0 : i32
    %c0_i32_0 = arith.constant 0 : i32
    %c0_i32_1 = arith.constant 0 : i32
    return %c0_i32, %c0_i32_0 : i32, i32
  }
  func.func @transform_7(%arg0: i32) -> (i32, i32) {
    %c0_i32 = arith.constant 0 : i32
    %c0_i32_0 = arith.constant 0 : i32
    return %arg0, %c0_i32 : i32, i32
  }
}

</mosaic_0001>

<bundles_post_ra>
// kernel: actor_forward.1
= control target key start
LH: loop header
LB: loop body
LE: loop exit
PB: predicated region body
PF: predicated region fallthrough
CT: control target
= control target key end

     0   :  { %12 = vsyncpa [#allocation3], 0  ;;  %s1993_s0 = inlined_call_operand.vmem [shape: f32[16,32], index: 0, kind: input, shape index: {}]   ;;  %s1994_s1 = inlined_call_operand.hbm [shape: bf16[32,512], index: 1, kind: input, shape index: {}]   ;;  %s1995_s2 = inlined_call_operand.vmem [shape: f32[1,512], index: 2, kind: input, shape index: {}]   ;;  %s1996_s3 = inlined_call_operand.hbm [shape: bf16[512,384], index: 3, kind: input, shape index: {}]   ;;  %s1997_s4 = inlined_call_operand.vmem [shape: f32[1,384], index: 4, kind: input, shape index: {}]   ;;  %s1998_s5 = inlined_call_operand.hbm [shape: bf16[384,128], index: 5, kind: input, shape index: {}]   ;;  %s1999_s6 = inlined_call_operand.vmem [shape: f32[1,128], index: 6, kind: input, shape index: {}]   ;;  %s2000_s7 = inlined_call_operand.vmem [shape: f32[16,4], index: 7, kind: output, shape index: {}]  }
   0x1   :  { %13 = vsyncpa [#allocation5], 0  ;;  %s1853_s24 = smov [#allocation4]   ;;  %s1783_s28 = scalar_lea.hbm %s1996_s3, 12288 }
   0x2   :  { %s35_s25 = sshll.u32 %s1853_s24, 4  ;;  %p1784_p0 = scmp.ne.s32.totalorder %s1996_s3, %s1783_s28  ;;  %s36_s25 = int_to_ptr.vmem [resolvable:$true] %s35_s25 }
   0x3   :  { %p1787_p1 = scmp.lt.u32.totalorder %s1783_s28, %s1996_s3 }
   0x5   :  { %p1789_p2 = pnand %p1787_p1, %p1784_p0 }
   0x7   :  { %1792 = shalt.err (!%p1789_p2)
}
   0x8   :  { %s1793_s10 = scalar_lea.vmem %s36_s25, 12288  ;;  %p1798_p4 = scmp.lt.s32.totalorder %s36_s25, %s36_s25 }
   0x9   :  { %p1794_p3 = scmp.ne.s32.totalorder %s36_s25, %s1793_s10  ;;  %p1799_p5 = scmp.lt.s32.totalorder %s1793_s10, %s1793_s10 }
   0xb   :  { %p1800_p6 = por %p1799_p5, %p1798_p4 }
   0xd   :  { %p1801_p7 = pnand %p1800_p6, %p1794_p3 }
   0xf   :  { %1804 = shalt.err (!%p1801_p7)
}
  0x10   :  { %s1854_s11 = smov 192   ;;  %s1855_s12 = smov 12  }
  0x11   :  { %41 = dma.hbm_to_vmem [thread:$0]  %s1996_s3, 12288, %s36_s25, [#allocation5], %s1854_s11, %s1854_s11, %s1855_s12  }
  0x12   :  { %s1856_s15 = smov [#allocation2]   ;;  %s1805_s19 = scalar_lea.hbm %s1994_s1, 1024 }
  0x13   :  { %s21_s16 = sshll.u32 %s1856_s15, 4  ;;  %p1806_p8 = scmp.ne.s32.totalorder %s1994_s1, %s1805_s19  ;;  %s22_s16 = int_to_ptr.vmem [resolvable:$true] %s21_s16 }
  0x14   :  { %p1809_p9 = scmp.lt.u32.totalorder %s1805_s19, %s1994_s1 }
  0x16   :  { %p1811_p10 = pnand %p1809_p9, %p1806_p8 }
  0x18   :  { %1814 = shalt.err (!%p1811_p10)
}
  0x19   :  { %s1815_s24 = scalar_lea.vmem %s22_s16, 1024  ;;  %p1820_p12 = scmp.lt.s32.totalorder %s22_s16, %s22_s16 }
  0x1a   :  { %p1816_p11 = scmp.ne.s32.totalorder %s22_s16, %s1815_s24  ;;  %p1821_p13 = scmp.lt.s32.totalorder %s1815_s24, %s1815_s24 }
  0x1c   :  { %p1822_p0 = por %p1821_p13, %p1820_p12 }
  0x1e   :  { %p1823_p1 = pnand %p1822_p0, %p1816_p11 }
  0x20   :  { %1826 = shalt.err (!%p1823_p1)
}
  0x21   :  { %s1857_s3 = smov 256   ;;  %s1858_s25 = smov 16  }
  0x22   :  { %27 = dma.hbm_to_vmem [thread:$0]  %s1994_s1, 1024, %s22_s16, [#allocation3], %s1857_s3, %s1857_s3, %s1858_s25  }
  0x23   :  { %s1859_s28 = smov [#allocation6]   ;;  %s1827_s9 = scalar_lea.hbm %s1998_s5, 3072 }
  0x24   :  { %s49_s29 = sshll.u32 %s1859_s28, 4  ;;  %p1828_p2 = scmp.ne.s32.totalorder %s1998_s5, %s1827_s9  ;;  %s50_s29 = int_to_ptr.vmem [resolvable:$true] %s49_s29 }
  0x25   :  { %p1831_p3 = scmp.lt.u32.totalorder %s1827_s9, %s1998_s5 }
  0x27   :  { %p1833_p4 = pnand %p1831_p3, %p1828_p2 }
  0x29   :  { %1836 = shalt.err (!%p1833_p4)
}
  0x2a   :  { %s1837_s14 = scalar_lea.vmem %s50_s29, 3072  ;;  %p1842_p6 = scmp.lt.s32.totalorder %s50_s29, %s50_s29 }
  0x2b   :  { %p1838_p5 = scmp.ne.s32.totalorder %s50_s29, %s1837_s14  ;;  %p1843_p7 = scmp.lt.s32.totalorder %s1837_s14, %s1837_s14 }
  0x2d   :  { %p1844_p8 = por %p1843_p7, %p1842_p6 }
  0x2f   :  { %p1845_p9 = pnand %p1844_p8, %p1838_p5 }
  0x31   :  { %1848 = shalt.err (!%p1845_p9)
}
  0x32   :  { %s1860_s1 = smov 64   ;;  %s1861_s15 = smov 4  }
  0x33   :  { %55 = dma.hbm_to_vmem [thread:$0]  %s1998_s5, 3072, %s50_s29, [#allocation5], %s1860_s1, %s1860_s1, %s1861_s15  }
  0x34   :  { %1849 = dma.done.wait [#allocation3], 1024  }
  0x35   :  { %1850 = vsyncadd [#allocation3], 4294966272 }
  0x36   :  { %1851 = dma.done.wait [#allocation5], 15360  }
  0x37   :  { %1852 = vsyncadd [#allocation5], 4294951936  ;;  %v1862_v0 = vmov 0   ;;  %v1615_v1 = vld [vmem:[#allocation2 + $0x4] ss:$16 sps:$4 sm:$0xff]   ;;  %v69_v6 = vld [vmem:[%s1993_s0 + $0x8] sm:$0xff]  ;;  %v81_v62 = vlaneseq }
  0x38   :  { %177 = vmatprep.mubr.bf16.mxu0 %v1862_v0  ;;  %220 = vmatprep.mubr.bf16.mxu1 %v1862_v0  ;;  %v1617_v2 = vld [vmem:[#allocation2] ss:$16 sps:$4 sm:$0xff]   ;;  %v1618_v3 = vld [vmem:[#allocation2 + $0x24] ss:$16 sps:$4 sm:$0xff]   ;;  %v1621_v7 = vld [vmem:[#allocation2 + $0xc] ss:$16 sps:$4 sm:$0xff]  }
  0x39   :  { %145 = vmatprep.subr.bf16.mxu0 %v1615_v1  ;;  %v1620_v4 = vld [vmem:[#allocation2 + $0x20] ss:$16 sps:$4 sm:$0xff]   ;;  %v1623_v8 = vld [vmem:[#allocation2 + $0x8] ss:$16 sps:$4 sm:$0xff]   ;;  %v1624_v9 = vld [vmem:[#allocation2 + $0x2c] ss:$16 sps:$4 sm:$0xff]   ;;  %188 = vmatprep.subr.bf16.mxu1 %v1621_v7 }
  0x3a   :  { %v68_v5 = vld [vmem:[%s1993_s0] sm:$0xff]  ;;  %146 = vmatpush1.bf16.msra.mxu0 %v1617_v2  ;;  %v1626_v10 = vld [vmem:[#allocation2 + $0x28] ss:$16 sps:$4 sm:$0xff]   ;;  %vm141_vm0 = vcmask 261120   ;;  %189 = vmatpush1.bf16.msra.mxu1 %v1623_v8  ;;  %v1633_v17 = vld [vmem:[#allocation4 + $0x30] ss:$12 sps:$4 sm:$0xff]  }
  0x3b   :  { %147 = vmatprep.subr.bf16.mxu0 %v1618_v3  ;;  %v70_v11 = vpack.c.bf16 %v69_v6, %v68_v5  ;;  %v1627_v12 = vld [vmem:[#allocation4] ss:$12 sps:$4 sm:$0xff]   ;;  %v1629_v13 = vld [vmem:[#allocation4 + $0x4] ss:$12 sps:$4 sm:$0xff]   ;;  %190 = vmatprep.subr.bf16.mxu1 %v1624_v9  ;;  %v1632_v14 = vld [vmem:[#allocation4 + $0x1c] ss:$12 sps:$4 sm:$0xff]  }
  0x3c   :  { %v1630_v15 = vld [vmem:[#allocation4 + $0x18] ss:$12 sps:$4 sm:$0xff]   ;;  %v1635_v16 = vld [vmem:[#allocation4 + $0x34] ss:$12 sps:$4 sm:$0xff]   ;;  %v1644_v26 = vld [vmem:[#allocation4 + $0x7c] ss:$12 sps:$4 sm:$0xff]  }
  0x3d   :  { %v1638_v18 = vld [vmem:[#allocation4 + $0x4c] ss:$12 sps:$4 sm:$0xff]   ;;  %v1636_v19 = vld [vmem:[#allocation4 + $0x48] ss:$12 sps:$4 sm:$0xff]   ;;  %v1641_v22 = vld [vmem:[#allocation4 + $0x64] ss:$12 sps:$4 sm:$0xff]  }
  0x3e   :  { %148 = vmatpush1.bf16.msra.mxu0 %v1620_v4  ;;  %191 = vmatpush1.bf16.msra.mxu1 %v1626_v10  ;;  %v1654_v20 = vld [vmem:[#allocation4 + $0xc8] ss:$12 sps:$4 sm:$0xff]   ;;  %v1639_v23 = vld [vmem:[#allocation4 + $0x60] ss:$12 sps:$4 sm:$0xff]   ;;  %v1664_v27 = vld [vmem:[#allocation4 + $0xf8] ss:$12 sps:$4 sm:$0xff]  }
  0x3f   :  { %900 = vmatprep.subr.bf16.mxu0 %v1629_v13  ;;  %v1655_v21 = vld [vmem:[#allocation4 + $0x8] ss:$12 sps:$4 sm:$0xff]   ;;  %1500 = vmatprep.subr.bf16.mxu1 %v1654_v20  ;;  %v1659_v24 = vld [vmem:[#allocation4 + $0xe0] ss:$12 sps:$4 sm:$0xff]   ;;  %v1665_v28 = vld [vmem:[#allocation4 + $0x38] ss:$12 sps:$4 sm:$0xff]  }
  0x40   :  { %v1660_v25 = vld [vmem:[#allocation4 + $0x20] ss:$12 sps:$4 sm:$0xff]   ;;  %v1642_v29 = vld [vmem:[#allocation4 + $0x78] ss:$12 sps:$4 sm:$0xff]   ;;  %v1669_v31 = vld [vmem:[#allocation4 + $0x110] ss:$12 sps:$4 sm:$0xff]  }
  0x41   :  { %1377 = vmatmul.mubr.msk.bf16.vlgmr.msra.gmra.mrb[0].mxu0 %vm141_vm0, %v70_v11  ;;  %1378 = vmatmul.mubr.msk.bf16.vlgmr.msra.gmra.mrb[0].mxu1 %vm141_vm0, %v70_v11  ;;  %v1647_v30 = vld [vmem:[#allocation4 + $0x94] ss:$12 sps:$4 sm:$0xff]   ;;  %v1670_v32 = vld [vmem:[#allocation4 + $0x50] ss:$12 sps:$4 sm:$0xff]   ;;  %v1650_v34 = vld [vmem:[#allocation4 + $0xac] ss:$12 sps:$4 sm:$0xff]  }
  0x42   :  { %901 = vmatpush1.bf16.msra.mxu0 %v1627_v12  ;;  %1501 = vmatpush3.bf16.msra.mxu1 %v1655_v21  ;;  %v1645_v33 = vld [vmem:[#allocation4 + $0x90] ss:$12 sps:$4 sm:$0xff]   ;;  %v1674_v35 = vld [vmem:[#allocation4 + $0x128] ss:$12 sps:$4 sm:$0xff]   ;;  %v1679_v38 = vld [vmem:[#allocation4 + $0x140] ss:$12 sps:$4 sm:$0xff]  }
  0x43   :  { %902 = vmatprep.subr.bf16.mxu0 %v1632_v14  ;;  %1502 = vmatprep.subr.bf16.mxu1 %v1659_v24  ;;  %v1675_v36 = vld [vmem:[#allocation4 + $0x68] ss:$12 sps:$4 sm:$0xff]   ;;  %v1653_v39 = vld [vmem:[#allocation4 + $0xc4] ss:$12 sps:$4 sm:$0xff]   ;;  %v1680_v40 = vld [vmem:[#allocation4 + $0x80] ss:$12 sps:$4 sm:$0xff]  }
  0x44   :  { %v1648_v37 = vld [vmem:[#allocation4 + $0xa8] ss:$12 sps:$4 sm:$0xff]   ;;  %v1651_v41 = vld [vmem:[#allocation4 + $0xc0] ss:$12 sps:$4 sm:$0xff]   ;;  %v1656_v43 = vld [vmem:[#allocation4 + $0xd8] ss:$12 sps:$4 sm:$0xff]  }
  0x45   :  { %v1658_v42 = vld [vmem:[#allocation4 + $0xdc] ss:$12 sps:$4 sm:$0xff]   ;;  %v1663_v44 = vld [vmem:[#allocation4 + $0xf4] ss:$12 sps:$4 sm:$0xff]   ;;  %v1668_v46 = vld [vmem:[#allocation4 + $0x10c] ss:$12 sps:$4 sm:$0xff]  }
  0x46   :  { %903 = vmatpush1.bf16.msra.mxu0 %v1630_v15  ;;  %1503 = vmatpush3.bf16.msra.mxu1 %v1660_v25  ;;  %v1661_v45 = vld [vmem:[#allocation4 + $0xf0] ss:$12 sps:$4 sm:$0xff]   ;;  %v1666_v47 = vld [vmem:[#allocation4 + $0x108] ss:$12 sps:$4 sm:$0xff]   ;;  %v1671_v49 = vld [vmem:[#allocation4 + $0x120] ss:$12 sps:$4 sm:$0xff]  }
  0x47   :  { %904 = vmatprep.subr.bf16.mxu0 %v1635_v16  ;;  %1504 = vmatprep.subr.bf16.mxu1 %v1664_v27  ;;  %v1673_v48 = vld [vmem:[#allocation4 + $0x124] ss:$12 sps:$4 sm:$0xff]   ;;  %v1678_v50 = vld [vmem:[#allocation4 + $0x13c] ss:$12 sps:$4 sm:$0xff]   ;;  %v1683_v52 = vld [vmem:[#allocation4 + $0x154] ss:$12 sps:$4 sm:$0xff]  }
  0x48   :  { %v1676_v51 = vld [vmem:[#allocation4 + $0x138] ss:$12 sps:$4 sm:$0xff]   ;;  %v1681_v54 = vld [vmem:[#allocation4 + $0x150] ss:$12 sps:$4 sm:$0xff]   ;;  %v1686_v58 = vld [vmem:[#allocation4 + $0x168] ss:$12 sps:$4 sm:$0xff]  }
  0x49   :  { %v1684_v53 = vld [vmem:[#allocation4 + $0x158] ss:$12 sps:$4 sm:$0xff]   ;;  %v1689_v57 = vld [vmem:[#allocation4 + $0x170] ss:$12 sps:$4 sm:$0xff]   ;;  %v1694_v61 = vld [vmem:[#allocation4 + $0x248] ss:$12 sps:$4 sm:$0xff]  }
  0x4a   :  { %905 = vmatpush1.bf16.msra.mxu0 %v1633_v17  ;;  %1505 = vmatpush3.bf16.msra.mxu1 %v1665_v28  ;;  %v1685_v55 = vld [vmem:[#allocation4 + $0x98] ss:$12 sps:$4 sm:$0xff]   ;;  %v1690_v59 = vld [vmem:[#allocation4 + $0xb0] ss:$12 sps:$4 sm:$0xff]   ;;  %v1947_v63 = vshrl.u32 %v81_v62, 7  ;;  %vm1864_vm1 = vmmov 0  }
  0x4b   :  { %906 = vmatprep.subr.bf16.mxu0 %v1638_v18  ;;  %1506 = vmatprep.subr.bf16.mxu1 %v1669_v31  ;;  %v1688_v56 = vld [vmem:[#allocation4 + $0x16c] ss:$12 sps:$4 sm:$0xff]   ;;  %v1693_v60 = vld [vmem:[#allocation4 + $0x184] ss:$12 sps:$4 sm:$0xff]   ;;  %v79_v1 = vld [vmem:[%s1995_s2] sm:$0xf] }
  0x4c   :  { %v83_v0 = vsub.s32 0, %v1947_v63  ;;  %v87_v2 = vsub.s32 1, %v1947_v63  ;;  %v91_v4 = vsub.s32 2, %v1947_v63  ;;  %v95_v6 = vsub.s32 3, %v1947_v63  ;;  %v1691_v31 = vld [vmem:[#allocation4 + $0x180] ss:$12 sps:$4 sm:$0xff]  }
  0x4d   :  { %v1725_v62 = vld [vmem:[#allocation4 + $0x218] ss:$12 sps:$4 sm:$0xff]   ;;  %v1772_v63 = vld [vmem:[#allocation6 + $0x88] sm:$0xff]   ;;  %vm1360_vm2 = vcmask 31744  }
  0x4e   :  { %907 = vmatpush1.bf16.msra.mxu0 %v1636_v19  ;;  %1507 = vmatpush3.bf16.msra.mxu1 %v1670_v32  ;;  %v84_v3 = vrot.slane %v79_v1, %v83_v0  ;;  %v88_v5 = vrot.slane %v79_v1, %v87_v2  ;;  %v92_v10 = vrot.slane %v79_v1, %v91_v4  ;;  %v1695_v32 = vld [vmem:[#allocation4 + $0x188] ss:$12 sps:$4 sm:$0xff]  }
  0x4f   :  { %908 = vmatprep.subr.bf16.mxu0 %v1641_v22  ;;  %1508 = vmatprep.subr.bf16.mxu1 %v1674_v35  ;;  %v96_v13 = vrot.slane %v79_v1, %v95_v6  ;;  %v1698_v35 = vld [vmem:[#allocation4 + $0x19c] ss:$12 sps:$4 sm:$0xff]   ;;  %v1728_v1 = vld [vmem:[#allocation4 + $0x22c] ss:$12 sps:$4 sm:$0xff]  }
  0x50   :  { %v1730_v6 = vld [vmem:[#allocation4 + $0x230] ss:$12 sps:$4 sm:$0xff]  }
  0x52   :  { %909 = vmatpush1.bf16.msra.mxu0 %v1639_v23  ;;  %1509 = vmatpush3.bf16.msra.mxu1 %v1675_v36  ;;  %v1699_v36 = vld [vmem:[#allocation4 + $0x260] ss:$12 sps:$4 sm:$0xff]  }
  0x53   :  { %910 = vmatprep.subr.bf16.mxu0 %v1644_v26  ;;  %1510 = vmatprep.subr.bf16.mxu1 %v1679_v38 }
  0x56   :  { %911 = vmatpush1.bf16.msra.mxu0 %v1642_v29  ;;  %1511 = vmatpush3.bf16.msra.mxu1 %v1680_v40  ;;  %v1696_v40 = vld [vmem:[#allocation4 + $0x198] ss:$12 sps:$4 sm:$0xff]  }
  0x57   :  { %912 = vmatprep.subr.bf16.mxu0 %v1647_v30  ;;  %1512 = vmatprep.subr.bf16.mxu1 %v1684_v53  ;;  %v1711_v53 = vld [vmem:[#allocation4 + $0x1e0] ss:$12 sps:$4 sm:$0xff]  }
  0x5a   :  { %913 = vmatpush1.bf16.msra.mxu0 %v1645_v33  ;;  %1513 = vmatpush3.bf16.msra.mxu1 %v1685_v55  ;;  %v1718_v55 = vld [vmem:[#allocation4 + $0x1fc] ss:$12 sps:$4 sm:$0xff]  }
  0x5b   :  { %914 = vmatprep.subr.bf16.mxu0 %v1650_v34  ;;  %1514 = vmatprep.subr.bf16.mxu1 %v1689_v57  ;;  %v1716_v57 = vld [vmem:[#allocation4 + $0x1f8] ss:$12 sps:$4 sm:$0xff]  }
  0x5e   :  { %915 = vmatpush1.bf16.msra.mxu0 %v1648_v37  ;;  %1515 = vmatpush3.bf16.msra.mxu1 %v1690_v59  ;;  %v1723_v59 = vld [vmem:[#allocation4 + $0x214] ss:$12 sps:$4 sm:$0xff]  }
  0x5f   :  { %916 = vmatprep.subr.bf16.mxu0 %v1653_v39  ;;  %1522 = vmatprep.subr.bf16.mxu1 %v1694_v61  ;;  %v1721_v61 = vld [vmem:[#allocation4 + $0x210] ss:$12 sps:$4 sm:$0xff]  }
  0x62   :  { %917 = vmatpush1.bf16.msra.mxu0 %v1651_v41  ;;  %v1700_v41 = vld [vmem:[#allocation4 + $0x1a0] ss:$12 sps:$4 sm:$0xff]  }
  0x63   :  { %918 = vmatprep.subr.bf16.mxu0 %v1658_v42 }
  0x66   :  { %919 = vmatpush1.bf16.msra.mxu0 %v1656_v43  ;;  %v1703_v43 = vld [vmem:[#allocation4 + $0x1b4] ss:$12 sps:$4 sm:$0xff]  }
  0x67   :  { %920 = vmatprep.subr.bf16.mxu0 %v1663_v44  ;;  %v1704_v44 = vld [vmem:[#allocation4 + $0x278] ss:$12 sps:$4 sm:$0xff]  }
  0x6a   :  { %921 = vmatpush1.bf16.msra.mxu0 %v1661_v45  ;;  %v1701_v45 = vld [vmem:[#allocation4 + $0x1b0] ss:$12 sps:$4 sm:$0xff]  }
  0x6b   :  { %922 = vmatprep.subr.bf16.mxu0 %v1668_v46  ;;  %v1705_v46 = vld [vmem:[#allocation4 + $0x1b8] ss:$12 sps:$4 sm:$0xff]  }
  0x6e   :  { %923 = vmatpush1.bf16.msra.mxu0 %v1666_v47  ;;  %v1708_v47 = vld [vmem:[#allocation4 + $0x1cc] ss:$12 sps:$4 sm:$0xff]  }
  0x6f   :  { %924 = vmatprep.subr.bf16.mxu0 %v1673_v48  ;;  %v1709_v48 = vld [vmem:[#allocation4 + $0x290] ss:$12 sps:$4 sm:$0xff]  }
  0x72   :  { %925 = vmatpush1.bf16.msra.mxu0 %v1671_v49  ;;  %v1706_v49 = vld [vmem:[#allocation4 + $0x1c8] ss:$12 sps:$4 sm:$0xff]  }
  0x73   :  { %926 = vmatprep.subr.bf16.mxu0 %v1678_v50  ;;  %v1710_v50 = vld [vmem:[#allocation4 + $0x1d0] ss:$12 sps:$4 sm:$0xff]  }
  0x76   :  { %927 = vmatpush1.bf16.msra.mxu0 %v1676_v51  ;;  %v1713_v51 = vld [vmem:[#allocation4 + $0x1e4] ss:$12 sps:$4 sm:$0xff]  }
  0x77   :  { %928 = vmatprep.subr.bf16.mxu0 %v1683_v52  ;;  %v1714_v52 = vld [vmem:[#allocation4 + $0x2a8] ss:$12 sps:$4 sm:$0xff]  }
  0x7a   :  { %929 = vmatpush1.bf16.msra.mxu0 %v1681_v54  ;;  %v1715_v54 = vld [vmem:[#allocation4 + $0x1e8] ss:$12 sps:$4 sm:$0xff]  }
  0x7b   :  { %930 = vmatprep.subr.bf16.mxu0 %v1688_v56  ;;  %v1719_v56 = vld [vmem:[#allocation4 + $0x2c0] ss:$12 sps:$4 sm:$0xff]  }
  0x7e   :  { %931 = vmatpush1.bf16.msra.mxu0 %v1686_v58  ;;  %v1720_v58 = vld [vmem:[#allocation4 + $0x200] ss:$12 sps:$4 sm:$0xff]  }
  0x7f   :  { %943 = vmatprep.subr.bf16.mxu0 %v1693_v60  ;;  %v1724_v60 = vld [vmem:[#allocation4 + $0x2d8] ss:$12 sps:$4 sm:$0xff]  }
 0x114   :  { %v179_v7 = vpop.f32.mrb[0].mxu0  ;;  %v222_v17 = vpop.f32.mrb[0].mxu1 }
 0x115   :  { %v180_v8 = vadd.f32 %v179_v7, %v84_v3  ;;  %v181_v9 = vpop.f32.mrb[1].mxu0  ;;  %v223_v20 = vadd.f32 %v222_v17, %v92_v10  ;;  %v224_v21 = vpop.f32.mrb[1].mxu1  ;;  %v1733_v7 = vld [vmem:[#allocation4 + $0x244] ss:$12 sps:$4 sm:$0xff]   ;;  %v1748_v17 = vld [vmem:[#allocation4 + $0x2bc] ss:$12 sps:$4 sm:$0xff]  }
 0x116   :  { %v182_v11 = vadd.f32 %v181_v9, %v88_v5  ;;  %v183_v12 = vpop.f32.mrb[2].mxu0  ;;  %v225_v24 = vadd.f32 %v224_v21, %v96_v13  ;;  %v226_v25 = vpop.f32.mrb[2].mxu1  ;;  %v1736_v9 = vld [vmem:[#allocation4 + $0x25c] ss:$12 sps:$4 sm:$0xff]   ;;  %v1754_v21 = vld [vmem:[#allocation4 + $0x2ec] ss:$12 sps:$4 sm:$0xff]  }
 0x117   :  { %v184_v14 = vadd.f32 %v183_v12, %v84_v3  ;;  %v185_v15 = vpop.f32.mrb[3].mxu0  ;;  %v231_v18 = vmax.f32 %v180_v8, 0.0  ;;  %v233_v27 = vmax.f32 %v223_v20, 0.0  ;;  %v227_v28 = vadd.f32 %v226_v25, %v92_v10  ;;  %v228_v29 = vpop.f32.mrb[3].mxu1  ;;  %v1729_v3 = vld [vmem:[#allocation4 + $0x2f0] ss:$12 sps:$4 sm:$0xff]  }
 0x118   :  { %v186_v16 = vadd.f32 %v185_v15, %v88_v5  ;;  %v232_v22 = vmax.f32 %v182_v11, 0.0  ;;  %v234_v33 = vmax.f32 %v225_v24, 0.0  ;;  %v229_v34 = vadd.f32 %v228_v29, %v96_v13  ;;  %v1726_v5 = vld [vmem:[#allocation4 + $0x228] ss:$12 sps:$4 sm:$0xff]   ;;  %v1731_v8 = vld [vmem:[#allocation4 + $0x240] ss:$12 sps:$4 sm:$0xff]  }
 0x119   :  { %v235_v19 = vmax.f32 %v184_v14, 0.0  ;;  %v237_v37 = vmax.f32 %v227_v28, 0.0  ;;  %v1734_v10 = vld [vmem:[#allocation4 + $0x258] ss:$12 sps:$4 sm:$0xff]   ;;  %v1739_v11 = vld [vmem:[#allocation4 + $0x274] ss:$12 sps:$4 sm:$0xff]  }
 0x11a   :  { %v236_v23 = vmax.f32 %v186_v16, 0.0  ;;  %v238_v38 = vmax.f32 %v229_v34, 0.0  ;;  %v1737_v12 = vld [vmem:[#allocation4 + $0x270] ss:$12 sps:$4 sm:$0xff]   ;;  %v1742_v13 = vld [vmem:[#allocation4 + $0x28c] ss:$12 sps:$4 sm:$0xff]  }
 0x11b   :  { %v239_v26 = vpack.c.bf16 %v235_v19, %v231_v18  ;;  %v1962_v39 = vpack.c.bf16 %v237_v37, %v233_v27  ;;  %v1740_v14 = vld [vmem:[#allocation4 + $0x288] ss:$12 sps:$4 sm:$0xff]   ;;  %v1745_v15 = vld [vmem:[#allocation4 + $0x2a4] ss:$12 sps:$4 sm:$0xff]   ;;  %v1743_v16 = vld [vmem:[#allocation4 + $0x2a0] ss:$12 sps:$4 sm:$0xff]  }
 0x11c   :  { %v240_v30 = vpack.c.bf16 %v236_v23, %v232_v22  ;;  %v242_v42 = vpack.c.bf16 %v238_v38, %v234_v33  ;;  %v1746_v18 = vld [vmem:[#allocation4 + $0x2b8] ss:$12 sps:$4 sm:$0xff]   ;;  %v1751_v19 = vld [vmem:[#allocation4 + $0x2d4] ss:$12 sps:$4 sm:$0xff]   ;;  %v1749_v20 = vld [vmem:[#allocation4 + $0x2d0] ss:$12 sps:$4 sm:$0xff]  }
 0x11d   :  { %v1752_v22 = vld [vmem:[#allocation4 + $0x2e8] ss:$12 sps:$4 sm:$0xff]   ;;  %v1755_v23 = vld [vmem:[#allocation6 + $0x40] sm:$0xff]   ;;  %v1761_v29 = vld [vmem:[#allocation6 + $0x58] sm:$0xff]  }
 0x11e   :  { %932 = vmatprep.mubr.bf16.mxu0 %v240_v30  ;;  %1018 = vmatprep.mubr.bf16.mxu1 %v240_v30  ;;  %v1756_v24 = vld [vmem:[#allocation6] sm:$0xff]   ;;  %v1757_v25 = vld [vmem:[#allocation6 + $0x48] sm:$0xff]   ;;  %v1759_v27 = vld [vmem:[#allocation6 + $0x50] sm:$0xff]  }
 0x11f   :  { %933 = vmatmul.mubr.bf16.vlgmr.msra.gmra.mrb[4].mxu0 %v239_v26  ;;  %1019 = vmatmul.mubr.bf16.vlgmr.msra.gmra.mrb[4].mxu1 %v239_v26  ;;  %v1758_v26 = vld [vmem:[#allocation6 + $0x8] sm:$0xff]   ;;  %v1760_v28 = vld [vmem:[#allocation6 + $0x10] sm:$0xff]   ;;  %v1762_v30 = vld [vmem:[#allocation6 + $0x18] sm:$0xff]  }
 0x120   :  { %944 = vmatpush1.bf16.msra.mxu0 %v1691_v31  ;;  %1523 = vmatpush3.bf16.msra.mxu1 %v1695_v32  ;;  %v1763_v31 = vld [vmem:[#allocation6 + $0x60] sm:$0xff]   ;;  %v1765_v33 = vld [vmem:[#allocation6 + $0x68] sm:$0xff]   ;;  %v1769_v37 = vld [vmem:[#allocation6 + $0x78] sm:$0xff]  }
 0x121   :  { %945 = vmatprep.subr.bf16.mxu0 %v1698_v35  ;;  %1524 = vmatprep.subr.bf16.mxu1 %v1699_v36  ;;  %v1764_v32 = vld [vmem:[#allocation6 + $0x20] sm:$0xff]   ;;  %v1766_v34 = vld [vmem:[#allocation6 + $0x28] sm:$0xff]   ;;  %v1767_v35 = vld [vmem:[#allocation6 + $0x70] sm:$0xff]  }
 0x122   :  { %1059 = vmatprep.mubr.bf16.mxu1 %v242_v42  ;;  %975 = vmatprep.mubr.bf16.mxu0 %v242_v42  ;;  %v1768_v36 = vld [vmem:[#allocation6 + $0x30] sm:$0xff]   ;;  %v1770_v38 = vld [vmem:[#allocation6 + $0x38] sm:$0xff]  }
 0x124   :  { %946 = vmatpush1.bf16.msra.mxu0 %v1696_v40  ;;  %1525 = vmatpush3.bf16.msra.mxu1 %v1700_v41 }
 0x125   :  { %947 = vmatprep.subr.bf16.mxu0 %v1703_v43  ;;  %1526 = vmatprep.subr.bf16.mxu1 %v1704_v44 }
 0x128   :  { %948 = vmatpush1.bf16.msra.mxu0 %v1701_v45  ;;  %1527 = vmatpush3.bf16.msra.mxu1 %v1705_v46  ;;  %v371_v46 = vld [vmem:[%s1997_s4] sm:$0x7] }
 0x129   :  { %949 = vmatprep.subr.bf16.mxu0 %v1708_v47  ;;  %1528 = vmatprep.subr.bf16.mxu1 %v1709_v48  ;;  %v384_v47 = vrot.slane %v371_v46, %v91_v4 }
 0x12c   :  { %950 = vmatpush1.bf16.msra.mxu0 %v1706_v49  ;;  %1529 = vmatpush3.bf16.msra.mxu1 %v1710_v50 }
 0x12d   :  { %951 = vmatprep.subr.bf16.mxu0 %v1713_v51  ;;  %1530 = vmatprep.subr.bf16.mxu1 %v1714_v52 }
 0x130   :  { %952 = vmatpush1.bf16.msra.mxu0 %v1711_v53  ;;  %1531 = vmatpush3.bf16.msra.mxu1 %v1715_v54 }
 0x131   :  { %953 = vmatprep.subr.bf16.mxu0 %v1718_v55  ;;  %1532 = vmatprep.subr.bf16.mxu1 %v1719_v56 }
 0x134   :  { %954 = vmatpush1.bf16.msra.mxu0 %v1716_v57  ;;  %1533 = vmatpush3.bf16.msra.mxu1 %v1720_v58 }
 0x135   :  { %955 = vmatprep.subr.bf16.mxu0 %v1723_v59  ;;  %1534 = vmatprep.subr.bf16.mxu1 %v1724_v60 }
 0x138   :  { %956 = vmatpush1.bf16.msra.mxu0 %v1721_v61  ;;  %1535 = vmatpush3.bf16.msra.mxu1 %v1725_v62  ;;  %v376_v61 = vrot.slane %v371_v46, %v83_v0  ;;  %v380_v62 = vrot.slane %v371_v46, %v87_v2  ;;  %v1773_v0 = vld [vmem:[#allocation6 + $0x90] sm:$0xff]   ;;  %v1774_v2 = vld [vmem:[#allocation6 + $0x98] sm:$0xff]  }
 0x139   :  { %957 = vmatprep.subr.bf16.mxu0 %v1728_v1  ;;  %1536 = vmatprep.subr.bf16.mxu1 %v1729_v3 }
 0x13c   :  { %958 = vmatpush1.bf16.msra.mxu0 %v1726_v5  ;;  %1537 = vmatpush3.bf16.msra.mxu1 %v1730_v6 }
 0x13d   :  { %959 = vmatprep.subr.bf16.mxu0 %v1733_v7  ;;  %1544 = vmatprep.subr.bf16.mxu1 %v1755_v23 }
 0x13f   :  { %1060 = vmatmul.mubr.bf16.vlgmr.msra.gmra.mrb[8].mxu1 %v1962_v39 }
 0x140   :  { %960 = vmatpush1.bf16.msra.mxu0 %v1731_v8  ;;  %1545 = vmatpush3.bf16.msra.mxu1 %v1756_v24 }
 0x141   :  { %961 = vmatprep.subr.bf16.mxu0 %v1736_v9  ;;  %1546 = vmatprep.subr.bf16.mxu1 %v1757_v25 }
 0x144   :  { %962 = vmatpush1.bf16.msra.mxu0 %v1734_v10  ;;  %1547 = vmatpush3.bf16.msra.mxu1 %v1758_v26 }
 0x145   :  { %963 = vmatprep.subr.bf16.mxu0 %v1739_v11  ;;  %1548 = vmatprep.subr.bf16.mxu1 %v1759_v27  ;;  %v1475_v27 = vld [vmem:[%s1999_s6] ss:$0 sm:$0xff] }
 0x148   :  { %964 = vmatpush1.bf16.msra.mxu0 %v1737_v12  ;;  %1549 = vmatpush3.bf16.msra.mxu1 %v1760_v28 }
 0x149   :  { %965 = vmatprep.subr.bf16.mxu0 %v1742_v13  ;;  %1550 = vmatprep.subr.bf16.mxu1 %v1761_v29 }
 0x14c   :  { %966 = vmatpush1.bf16.msra.mxu0 %v1740_v14  ;;  %1551 = vmatpush3.bf16.msra.mxu1 %v1762_v30 }
 0x14d   :  { %967 = vmatprep.subr.bf16.mxu0 %v1745_v15  ;;  %1552 = vmatprep.subr.bf16.mxu1 %v1763_v31 }
 0x150   :  { %968 = vmatpush1.bf16.msra.mxu0 %v1743_v16  ;;  %1553 = vmatpush3.bf16.msra.mxu1 %v1764_v32  ;;  %v1771_v16 = vld [vmem:[#allocation6 + $0x80] sm:$0xff]  }
 0x151   :  { %969 = vmatprep.subr.bf16.mxu0 %v1748_v17  ;;  %1554 = vmatprep.subr.bf16.mxu1 %v1765_v33  ;;  %v1775_v17 = vld [vmem:[#allocation6 + $0xa0] sm:$0xff]  }
 0x154   :  { %970 = vmatpush1.bf16.msra.mxu0 %v1746_v18  ;;  %1555 = vmatpush3.bf16.msra.mxu1 %v1766_v34  ;;  %v1776_v18 = vld [vmem:[#allocation6 + $0xa8] sm:$0xff]  }
 0x155   :  { %971 = vmatprep.subr.bf16.mxu0 %v1751_v19  ;;  %1556 = vmatprep.subr.bf16.mxu1 %v1767_v35  ;;  %v1777_v19 = vld [vmem:[#allocation6 + $0xb0] sm:$0xff]  }
 0x158   :  { %972 = vmatpush1.bf16.msra.mxu0 %v1749_v20  ;;  %1557 = vmatpush3.bf16.msra.mxu1 %v1768_v36  ;;  %v1778_v20 = vld [vmem:[#allocation6 + $0xb8] sm:$0xff]  }
 0x159   :  { %973 = vmatprep.subr.bf16.mxu0 %v1754_v21  ;;  %1558 = vmatprep.subr.bf16.mxu1 %v1769_v37 }
 0x15c   :  { %974 = vmatpush1.bf16.msra.mxu0 %v1752_v22  ;;  %1559 = vmatpush3.bf16.msra.mxu1 %v1770_v38 }
 0x15f   :  { %976 = vmatmul.mubr.bf16.vlgmr.msra.gmra.mrb[4].mxu0 %v1962_v39  ;;  %v1863_v39 = vmov 0.0  }
 0x160   :  { %1575 = vmatprep.subr.bf16.mxu1 %v1863_v39 }
 0x1f2   :  { %v1516_v40 = vpop.f32.mrb[4].mxu1 }
 0x1f3   :  { %v1517_v41 = vpop.f32.mrb[5].mxu1 }
 0x1f4   :  { %v1518_v42 = vadd.f32 %v1517_v41, %v1516_v40  ;;  %v1519_v43 = vpop.f32.mrb[6].mxu1 }
 0x1f5   :  { %v1520_v44 = vpop.f32.mrb[7].mxu1 }
 0x1f6   :  { %v1521_v45 = vadd.f32 %v1520_v44, %v1519_v43  ;;  %v1021_v50 = vadd.f32 %v1518_v42, %v384_v47 }
 0x1f8   :  { %v1024_v54 = vadd.f32 %v1521_v45, %v384_v47 }
 0x212   :  { %v1538_v48 = vpop.f32.mrb[8].mxu1 }
 0x213   :  { %v1539_v49 = vpop.f32.mrb[9].mxu1 }
 0x214   :  { %v1540_v51 = vadd.f32 %v1539_v49, %v1538_v48  ;;  %v1541_v52 = vpop.f32.mrb[10].mxu1 }
 0x215   :  { %v1542_v53 = vpop.f32.mrb[11].mxu1 }
 0x216   :  { %v1062_v55 = vadd.f32 %v1540_v51, %v1021_v50  ;;  %v1543_v56 = vadd.f32 %v1542_v53, %v1541_v52 }
 0x218   :  { %v1065_v57 = vadd.f32 %v1543_v56, %v1024_v54  ;;  %v1070_v58 = vmax.f32 %v1062_v55, 0.0 }
 0x21a   :  { %v1073_v59 = vmax.f32 %v1065_v57, 0.0 }
 0x21c   :  { %v1076_v60 = vpack.c.bf16 %v1073_v59, %v1070_v58 }
 0x232   :  { %v977_v4 = vpop.f32.mrb[4].mxu0 }
 0x233   :  { %v1595_v1 = vadd.f32 %v977_v4, %v376_v61  ;;  %v979_v3 = vpop.f32.mrb[5].mxu0 }
 0x234   :  { %v1596_v5 = vadd.f32 %v979_v3, %v380_v62  ;;  %v981_v6 = vpop.f32.mrb[6].mxu0 }
 0x235   :  { %v1597_v7 = vadd.f32 %v981_v6, %v376_v61  ;;  %v983_v8 = vpop.f32.mrb[7].mxu0  ;;  %v1068_v10 = vmax.f32 %v1595_v1, 0.0 }
 0x236   :  { %v1598_v9 = vadd.f32 %v983_v8, %v380_v62  ;;  %v1069_v12 = vmax.f32 %v1596_v5, 0.0 }
 0x237   :  { %v1071_v11 = vmax.f32 %v1597_v7, 0.0 }
 0x238   :  { %v1072_v13 = vmax.f32 %v1598_v9, 0.0 }
 0x239   :  { %v1074_v14 = vpack.c.bf16 %v1071_v11, %v1068_v10 }
 0x23a   :  { %v1075_v15 = vpack.c.bf16 %v1072_v13, %v1069_v12 }
 0x23c   :  { %1308 = vmatprep.mubr.bf16.mxu1 %v1075_v15 }
 0x23d   :  { %1309 = vmatmul.mubr.bf16.vlgmr.msra.gmra.mrb[12].mxu1 %v1074_v14 }
 0x23e   :  { %1576 = vmatpush3.bf16.msra.mxu1 %v1771_v16  ;;  %1591 = vmatprep.mubr.msk.bf16.mxu1 %vm1864_vm1, %v1863_v39 }
 0x23f   :  { %1577 = vmatprep.subr.bf16.mxu1 %v1863_v39 }
 0x242   :  { %1578 = vmatpush3.bf16.msra.mxu1 %v1772_v63 }
 0x243   :  { %1579 = vmatprep.subr.bf16.mxu1 %v1863_v39 }
 0x246   :  { %1580 = vmatpush3.bf16.msra.mxu1 %v1773_v0 }
 0x247   :  { %1581 = vmatprep.subr.bf16.mxu1 %v1863_v39 }
 0x24a   :  { %1582 = vmatpush3.bf16.msra.mxu1 %v1774_v2 }
 0x24b   :  { %1583 = vmatprep.subr.bf16.mxu1 %v1863_v39 }
 0x24e   :  { %1584 = vmatpush3.bf16.msra.mxu1 %v1775_v17 }
 0x24f   :  { %1585 = vmatprep.subr.bf16.mxu1 %v1863_v39 }
 0x252   :  { %1586 = vmatpush3.bf16.msra.mxu1 %v1776_v18 }
 0x253   :  { %1587 = vmatprep.subr.bf16.mxu1 %v1863_v39 }
 0x256   :  { %1588 = vmatpush3.bf16.msra.mxu1 %v1777_v19 }
 0x257   :  { %1589 = vmatprep.subr.bf16.mxu1 %v1863_v39 }
 0x25a   :  { %1590 = vmatpush3.bf16.msra.mxu1 %v1778_v20 }
 0x25d   :  { %1592 = vmatmul.mubr.bf16.vlgmr.msra.gmra.mrb[16].mxu1 %v1076_v60 }
 0x310   :  { %v1560_v21 = vpop.f32.mrb[12].mxu1 }
 0x311   :  { %v1561_v22 = vpop.f32.mrb[13].mxu1 }
 0x312   :  { %v1562_v23 = vadd.f32 %v1561_v22, %v1560_v21  ;;  %v1563_v24 = vpop.f32.mrb[14].mxu1 }
 0x313   :  { %v1564_v25 = vpop.f32.mrb[15].mxu1 }
 0x314   :  { %v1565_v26 = vadd.f32 %v1564_v25, %v1563_v24  ;;  %v1311_v28 = vadd.f32 %v1562_v23, %v1475_v27 }
 0x316   :  { %v1314_v32 = vadd.f32 %v1565_v26, %v1475_v27 }
 0x330   :  { %v1351_v29 = vpop.f32.mrb[16].mxu1 }
 0x331   :  { %v1352_v30 = vadd.f32 %v1351_v29, %v1311_v28  ;;  %v1593_v31 = vpop.f32.mrb[17].mxu1 }
 0x332   :  { %v1354_v33 = vpop.f32.mrb[18].mxu1 }
 0x333   :  { %1779 = vtanh.f32 %v1352_v30  ;;  %v1355_v34 = vadd.f32 %v1354_v33, %v1314_v32  ;;  %v1594_v35 = vpop.f32.mrb[19].mxu1 }
 0x335   :  { %1781 = vtanh.f32 %v1355_v34 }
 0x33d   :  { %v1780_v36 = vpop.eup %1779 }
 0x33e   :  { %1361 = vst.msk [vmem:[%s2000_s7] sm:$0xff] %vm1360_vm2, %v1780_v36 }
 0x33f   :  { %v1782_v37 = vpop.eup %1781 }
 0x340   :  { %1362 = vst.msk [vmem:[%s2000_s7 + $0x8] sm:$0xff] %vm1360_vm2, %v1782_v37 }
 0x341   :  { %1367 = vsyncpa [#allocation3], 1 }
 0x342   :  { %1368 = vsyncpa [#allocation5], 1 }

</bundles_post_ra>
